<compile_context>
chip_gen: v7x
topology: tpu7x:2x2x1
jax: 0.10.0
libtpu: 0.0.40
codegen_flags: <defaults>
</compile_context>

<pallas_src>
import jax
import jax.numpy as jnp
from jax import lax
from jax.experimental import pallas as pl
from jax.experimental.pallas import tpu as pltpu

LN_EPS = 1e-5                      # config.layer_norm_eps (HF default)
_INV_SQRT2 = 0.7071067811865476


def _round_up(x, m):
    return ((x + m - 1) // m) * m


def _tpu_defaults():
    """Returns (default tm, vmem cap bytes, is_v7x) for the local TPU."""
    kind = ""
    try:
        kind = jax.devices()[0].device_kind.lower()
    except Exception:
        pass
    if "v6" in kind:                          # v6e: ~680 flop/B needed -> big tm
        return 1024, 96 * 1024 * 1024, False
    if "7" in kind:                           # v7x: ~310 flop/B per TC, 64 MiB VMEM
        return 512, 56 * 1024 * 1024, True
    if "v5 lite" in kind or "v5e" in kind or "v5lite" in kind:
        return 512, 96 * 1024 * 1024, False
    return 512, 64 * 1024 * 1024, False       # unknown / older: conservative


def _lm_head_kernel(x_ref, wd_ref, bd_ref, g_ref, beta_ref,
                    wdec_ref, bias_ref, out_ref, h_scratch):
    # grid = (token_tiles, vocab_tiles); vocab axis innermost.
    j = pl.program_id(1)

    @pl.when(j == 0)
    def _():
        # dense (bf16 x bf16 -> f32 accumulate) + exact erf GELU + LayerNorm,
        # computed once per token tile, cached (bf16) in VMEM scratch.
        h = jnp.dot(x_ref[...], wd_ref[...],
                    preferred_element_type=jnp.float32) + bd_ref[...]
        h = 0.5 * h * (1.0 + lax.erf(h * jnp.float32(_INV_SQRT2)))
        mu = jnp.mean(h, axis=-1, keepdims=True)
        d = h - mu
        var = jnp.mean(d * d, axis=-1, keepdims=True)
        hn = d * lax.rsqrt(var + jnp.float32(LN_EPS))
        h_scratch[...] = (hn * g_ref[...] + beta_ref[...]).astype(h_scratch.dtype)

    # decoder GEMM: bf16 operands, f32 accumulation, f32 bias add.
    logits = jnp.dot(h_scratch[...], wdec_ref[...],
                     preferred_element_type=jnp.float32) + bias_ref[...]
    out_ref[...] = logits.astype(out_ref.dtype)


def prepare_lm_head_params(w_dense, b_dense, ln_gamma, ln_beta,
                           w_decoder, b_decoder):
    """One-time parameter cast/reshape (do this at init, NOT per forward).

    Weights are in (in_features, out_features) layout, i.e. the transpose of
    torch nn.Linear.weight.
    """
    return (jnp.asarray(w_dense, jnp.bfloat16),
            jnp.asarray(b_dense, jnp.float32).reshape(1, -1),
            jnp.asarray(ln_gamma, jnp.float32).reshape(1, -1),
            jnp.asarray(ln_beta, jnp.float32).reshape(1, -1),
            jnp.asarray(w_decoder, jnp.bfloat16),
            jnp.asarray(b_decoder, jnp.float32).reshape(1, -1))


def roberta_lm_head(features, w_dense, b_dense, ln_gamma, ln_beta,
                    w_decoder, b_decoder, *, tm=None, tv=1024,
                    out_dtype=jnp.bfloat16):
    """features: (B, S, H); w_dense: (H, H); w_decoder: (H, V) [in, out].

    Pass the parameters through prepare_lm_head_params once so the per-call
    casts below become no-ops (bf16 weights, f32 biases / LN params).
    """
    B, S, H = features.shape
    V = w_decoder.shape[-1]
    N = B * S

    tm_default, vmem_cap, is_v7x = _tpu_defaults()
    tm = tm_default if tm is None else tm

    # Clamp tiles to the problem; keep (8, 128) alignment.
    tm = max(8, min(tm, _round_up(N, 8)))
    tv = max(128, min(tv, _round_up(V, 128)))
    if is_v7x and N > 8 and pl.cdiv(N, tm) < 2:
        # keep >= 2 token tiles so both v7x TensorCores get work
        tm = max(8, _round_up(pl.cdiv(N, 2), 8))
    grid_m = pl.cdiv(N, tm)
    grid_v = pl.cdiv(V, tv)

    # bf16 MXU operands (no-op casts if parameters were prepared at init).
    x2d = features.reshape(N, H).astype(jnp.bfloat16)
    wd = jnp.asarray(w_dense, jnp.bfloat16)
    wdec = jnp.asarray(w_decoder, jnp.bfloat16)
    bd2 = jnp.asarray(b_dense, jnp.float32).reshape(1, H)
    g2 = jnp.asarray(ln_gamma, jnp.float32).reshape(1, H)
    be2 = jnp.asarray(ln_beta, jnp.float32).reshape(1, H)
    bdec2 = jnp.asarray(b_decoder, jnp.float32).reshape(1, V)

    out_itemsize = jnp.dtype(out_dtype).itemsize
    vmem_bytes = (
        2 * tm * H * 2                 # x tile (bf16, double buffered)
        + H * H * 2                    # dense weight (bf16, single buffered)
        + 3 * H * 4                    # dense bias, gamma, beta (f32, single)
        + 2 * H * tv * 2               # decoder weight tile (bf16, double)
        + 2 * tv * 4                   # decoder bias tile (f32)
        + 2 * tm * tv * out_itemsize   # output tile
        + tm * H * 2                   # LN-output scratch (bf16)
        + 2 * tm * H * 4               # in-kernel f32 temporaries (dense/GELU/LN)
        + tm * tv * 4                  # in-kernel f32 logits before the cast
    )
    vmem_limit = int(min(max(1.25 * vmem_bytes + (4 << 20), 16 << 20), vmem_cap))

    cost = pl.CostEstimate(
        flops=2 * N * H * H + 2 * N * H * V,
        transcendentals=N * H,
        bytes_accessed=(N * H * 2 + H * H * 2          # activations + dense weight
                        + grid_m * H * V * 2           # decoder weight, streamed per token tile
                        + grid_m * V * 4               # decoder bias
                        + N * V * out_itemsize),       # logits writeback
    )

    def make_call(single_buffer_invariants):
        if single_buffer_invariants:
            def const_spec(shape):
                return pl.BlockSpec(shape, lambda i, j: (0, 0),
                                    pipeline_mode=pl.Buffered(1))
        else:
            def const_spec(shape):
                return pl.BlockSpec(shape, lambda i, j: (0, 0))
        return pl.pallas_call(
            _lm_head_kernel,
            out_shape=jax.ShapeDtypeStruct((N, V), out_dtype),
            grid_spec=pltpu.PrefetchScalarGridSpec(
                num_scalar_prefetch=0,
                grid=(grid_m, grid_v),
                in_specs=[
                    pl.BlockSpec((tm, H), lambda i, j: (i, 0)),   # x tile
                    const_spec((H, H)),                           # dense weight
                    const_spec((1, H)),                           # dense bias
                    const_spec((1, H)),                           # ln gamma
                    const_spec((1, H)),                           # ln beta
                    pl.BlockSpec((H, tv), lambda i, j: (0, j)),   # decoder weight tile
                    pl.BlockSpec((1, tv), lambda i, j: (0, j)),   # decoder bias tile
                ],
                out_specs=pl.BlockSpec((tm, tv), lambda i, j: (i, j)),
                scratch_shapes=[pltpu.VMEM((tm, H), jnp.bfloat16)],
            ),
            compiler_params=pltpu.CompilerParams(
                dimension_semantics=("parallel", "arbitrary"),
                vmem_limit_bytes=vmem_limit),
            cost_estimate=cost,
        )

    args = (x2d, wd, bd2, g2, be2, wdec, bdec2)
    try:
        out = make_call(True)(*args)
    except Exception:
        # pl.Buffered(1) unsupported on this jax version/backend: fall back to
        # default double buffering for the grid-invariant inputs.
        out = make_call(False)(*args)

    return out.reshape(B, S, V)


def _reference_fp32(features, w_dense, b_dense, ln_gamma, ln_beta,
                    w_decoder, b_decoder):
    """Full-precision reference matching the PyTorch RobertaLMHead forward."""
    x = features.astype(jnp.float32)
    h = x @ w_dense.astype(jnp.float32) + b_dense.astype(jnp.float32)
    h = 0.5 * h * (1.0 + lax.erf(h * jnp.float32(_INV_SQRT2)))
    mu = jnp.mean(h, axis=-1, keepdims=True)
    d = h - mu
    var = jnp.mean(d * d, axis=-1, keepdims=True)
    hn = d * lax.rsqrt(var + LN_EPS)
    hn = hn * ln_gamma.astype(jnp.float32) + ln_beta.astype(jnp.float32)
    return hn @ w_decoder.astype(jnp.float32) + b_decoder.astype(jnp.float32)


if __name__ == "__main__":
    # Small config consistent with the module: hidden_size=128, vocab_size=256.
    B, S, H, V = 2, 8, 128, 256

    key = jax.random.PRNGKey(0)
    k_feat, k_wd, k_bd, k_g, k_b, k_wdec = jax.random.split(key, 6)

    features = jax.random.normal(k_feat, (B, S, H), dtype=jnp.float32)
    # weights stored as (in_features, out_features) = nn.Linear.weight transposed
    w_dense = jax.random.normal(k_wd, (H, H), dtype=jnp.float32) * 0.02
    b_dense = jax.random.normal(k_bd, (H,), dtype=jnp.float32) * 0.02
    ln_gamma = jnp.ones((H,), jnp.float32) + 0.1 * jax.random.normal(k_g, (H,), jnp.float32)
    ln_beta = 0.1 * jax.random.normal(k_b, (H,), dtype=jnp.float32)
    w_decoder = jax.random.normal(k_wdec, (H, V), dtype=jnp.float32) * 0.02
    b_decoder = jnp.zeros((V,), dtype=jnp.float32)     # self.bias (tied), zeros

    # One-time parameter prep (bf16 weights, f32 biases/LN params) so the
    # per-call casts inside roberta_lm_head are no-ops.
    params = prepare_lm_head_params(w_dense, b_dense, ln_gamma, ln_beta,
                                    w_decoder, b_decoder)

    out = roberta_lm_head(features, *params)          # bf16 logits (default)
    out = jax.block_until_ready(out)
    assert out.shape == (B, S, V) and out.dtype == jnp.bfloat16

    ref = _reference_fp32(features, w_dense, b_dense, ln_gamma, ln_beta,
                          w_decoder, b_decoder)
    err = float(jnp.max(jnp.abs(out.astype(jnp.float32) - ref)))
    assert err < 3e-2, err

    # Ragged token/vocab counts exercised via in-kernel partial-block masking
    # (no wrapper-side padding or slicing); f32 logits path.
    B2, S2, V2 = 2, 7, 200
    f2 = jax.random.normal(jax.random.PRNGKey(1), (B2, S2, H), jnp.float32)
    w_dec2 = w_decoder[:, :V2]
    b_dec2 = b_decoder[:V2]
    out2 = roberta_lm_head(f2, w_dense, b_dense, ln_gamma, ln_beta,
                           w_dec2, b_dec2, out_dtype=jnp.float32)
    out2 = jax.block_until_ready(out2)
    ref2 = _reference_fp32(f2, w_dense, b_dense, ln_gamma, ln_beta,
                           w_dec2, b_dec2)
    err2 = float(jnp.max(jnp.abs(out2 - ref2)))
    assert out2.shape == (B2, S2, V2)
    assert err2 < 3e-2, err2

    print("KERNEL_OK")
</pallas_src>

<mosaic_0001>
module attributes {stable_mosaic.version = 11 : i64} {
  func.func @_lm_head_kernel(%arg0: i32, %arg1: i32, %arg2: memref<16x128xbf16, #tpu.memory_space<vmem>>, %arg3: memref<128x128xbf16, #tpu.memory_space<vmem>>, %arg4: memref<1x128xf32, #tpu.memory_space<vmem>>, %arg5: memref<1x128xf32, #tpu.memory_space<vmem>>, %arg6: memref<1x128xf32, #tpu.memory_space<vmem>>, %arg7: memref<128x256xbf16, #tpu.memory_space<vmem>>, %arg8: memref<1x256xf32, #tpu.memory_space<vmem>>, %arg9: memref<16x256xbf16, #tpu.memory_space<vmem>>, %arg10: memref<16x128xbf16, #tpu.memory_space<vmem>>) attributes {dimension_semantics = [#tpu.dimension_semantics<parallel>, #tpu.dimension_semantics<arbitrary>], iteration_bounds = array<i64: 1, 1>, scalar_prefetch = 0 : i64, scratch_operands = 1 : i64, tpu.core_type = #tpu.core_type<tc>, window_params = [{transform_indices = @transform_0, window_bounds = array<i64: 16, 128>}, {pipeline_mode = #tpu.pipeline_mode<synchronous>, transform_indices = @transform_1, window_bounds = array<i64: 128, 128>}, {pipeline_mode = #tpu.pipeline_mode<synchronous>, transform_indices = @transform_2, window_bounds = array<i64: 1, 128>}, {pipeline_mode = #tpu.pipeline_mode<synchronous>, transform_indices = @transform_3, window_bounds = array<i64: 1, 128>}, {pipeline_mode = #tpu.pipeline_mode<synchronous>, transform_indices = @transform_4, window_bounds = array<i64: 1, 128>}, {transform_indices = @transform_5, window_bounds = array<i64: 128, 256>}, {transform_indices = @transform_6, window_bounds = array<i64: 1, 256>}, {transform_indices = @transform_7, window_bounds = array<i64: 16, 256>}]} {
    %c0_i32 = arith.constant 0 : i32
    %0 = arith.cmpi eq, %arg1, %c0_i32 : i32
    %1 = arith.extui %0 : i1 to i32
    %c0_i32_0 = arith.constant 0 : i32
    %2 = arith.cmpi ne, %1, %c0_i32_0 : i32
    scf.if %2 {
      %c0_8 = arith.constant 0 : index
      %c0_9 = arith.constant 0 : index
      %11 = vector.load %arg2[%c0_8, %c0_9] : memref<16x128xbf16, #tpu.memory_space<vmem>>, vector<16x128xbf16>
      %c0_10 = arith.constant 0 : index
      %c0_11 = arith.constant 0 : index
      %12 = vector.load %arg3[%c0_10, %c0_11] : memref<128x128xbf16, #tpu.memory_space<vmem>>, vector<128x128xbf16>
      %cst_12 = arith.constant dense<0.000000e+00> : vector<16x128xf32>
      %13 = tpu.matmul %11, %12, %cst_12 {dimension_numbers = #tpu.dot_dimension_numbers<[1], [0], [0], [1], [0, 0, 1, 1], [], []>} : vector<16x128xbf16>, vector<128x128xbf16>, vector<16x128xf32> -> vector<16x128xf32>
      %c0_13 = arith.constant 0 : index
      %c0_14 = arith.constant 0 : index
      %14 = vector.load %arg4[%c0_13, %c0_14] : memref<1x128xf32, #tpu.memory_space<vmem>>, vector<1x128xf32>
      %15 = vector.broadcast %14 : vector<1x128xf32> to vector<16x128xf32>
      %16 = arith.addf %13, %15 : vector<16x128xf32>
      %cst_15 = arith.constant 5.000000e-01 : f32
      %17 = vector.broadcast %cst_15 : f32 to vector<16x128xf32>
      %18 = arith.mulf %17, %16 : vector<16x128xf32>
      %cst_16 = arith.constant 0.707106769 : f32
      %19 = vector.broadcast %cst_16 : f32 to vector<16x128xf32>
      %20 = arith.mulf %16, %19 : vector<16x128xf32>
      %21 = math.erf %20 : vector<16x128xf32>
      %cst_17 = arith.constant 1.000000e+00 : f32
      %22 = vector.broadcast %cst_17 : f32 to vector<16x128xf32>
      %23 = arith.addf %22, %21 : vector<16x128xf32>
      %24 = arith.mulf %18, %23 : vector<16x128xf32>
      %cst_18 = arith.constant dense<0.000000e+00> : vector<16xf32>
      %25 = vector.multi_reduction <add>, %24, %cst_18 [1] : vector<16x128xf32> to vector<16xf32>
      %26 = vector.shape_cast %25 : vector<16xf32> to vector<16x1xf32>
      %cst_19 = arith.constant 1.280000e+02 : f32
      %27 = vector.broadcast %cst_19 : f32 to vector<16x1xf32>
      %28 = arith.divf %26, %27 : vector<16x1xf32>
      %29 = vector.broadcast %28 : vector<16x1xf32> to vector<16x128xf32>
      %30 = arith.subf %24, %29 : vector<16x128xf32>
      %31 = arith.mulf %30, %30 : vector<16x128xf32>
      %cst_20 = arith.constant dense<0.000000e+00> : vector<16xf32>
      %32 = vector.multi_reduction <add>, %31, %cst_20 [1] : vector<16x128xf32> to vector<16xf32>
      %33 = vector.shape_cast %32 : vector<16xf32> to vector<16x1xf32>
      %cst_21 = arith.constant 1.280000e+02 : f32
      %34 = vector.broadcast %cst_21 : f32 to vector<16x1xf32>
      %35 = arith.divf %33, %34 : vector<16x1xf32>
      %cst_22 = arith.constant 9.99999974E-6 : f32
      %36 = vector.broadcast %cst_22 : f32 to vector<16x1xf32>
      %37 = arith.addf %35, %36 : vector<16x1xf32>
      %38 = math.rsqrt %37 : vector<16x1xf32>
      %39 = vector.broadcast %38 : vector<16x1xf32> to vector<16x128xf32>
      %40 = arith.mulf %30, %39 : vector<16x128xf32>
      %c0_23 = arith.constant 0 : index
      %c0_24 = arith.constant 0 : index
      %41 = vector.load %arg5[%c0_23, %c0_24] : memref<1x128xf32, #tpu.memory_space<vmem>>, vector<1x128xf32>
      %42 = vector.broadcast %41 : vector<1x128xf32> to vector<16x128xf32>
      %43 = arith.mulf %40, %42 : vector<16x128xf32>
      %c0_25 = arith.constant 0 : index
      %c0_26 = arith.constant 0 : index
      %44 = vector.load %arg6[%c0_25, %c0_26] : memref<1x128xf32, #tpu.memory_space<vmem>>, vector<1x128xf32>
      %45 = vector.broadcast %44 : vector<1x128xf32> to vector<16x128xf32>
      %46 = arith.addf %43, %45 : vector<16x128xf32>
      %47 = arith.truncf %46 : vector<16x128xf32> to vector<16x128xbf16>
      %c0_27 = arith.constant 0 : index
      %c0_28 = arith.constant 0 : index
      %48 = vector.load %arg10[%c0_27, %c0_28] : memref<16x128xbf16, #tpu.memory_space<vmem>>, vector<16x128xbf16>
      tpu.vector_store %arg10[%c0_27, %c0_28], %47 {strides = array<i32>} : memref<16x128xbf16, #tpu.memory_space<vmem>>, vector<16x128xbf16>,
    } else {
    }
    %c0 = arith.constant 0 : index
    %c0_1 = arith.constant 0 : index
    %3 = vector.load %arg10[%c0, %c0_1] : memref<16x128xbf16, #tpu.memory_space<vmem>>, vector<16x128xbf16>
    %c0_2 = arith.constant 0 : index
    %c0_3 = arith.constant 0 : index
    %4 = vector.load %arg7[%c0_2, %c0_3] : memref<128x256xbf16, #tpu.memory_space<vmem>>, vector<128x256xbf16>
    %cst = arith.constant dense<0.000000e+00> : vector<16x256xf32>
    %5 = tpu.matmul %3, %4, %cst {dimension_numbers = #tpu.dot_dimension_numbers<[1], [0], [0], [1], [0, 0, 1, 1], [], []>} : vector<16x128xbf16>, vector<128x256xbf16>, vector<16x256xf32> -> vector<16x256xf32>
    %c0_4 = arith.constant 0 : index
    %c0_5 = arith.constant 0 : index
    %6 = vector.load %arg8[%c0_4, %c0_5] : memref<1x256xf32, #tpu.memory_space<vmem>>, vector<1x256xf32>
    %7 = vector.broadcast %6 : vector<1x256xf32> to vector<16x256xf32>
    %8 = arith.addf %5, %7 : vector<16x256xf32>
    %9 = arith.truncf %8 : vector<16x256xf32> to vector<16x256xbf16>
    %c0_6 = arith.constant 0 : index
    %c0_7 = arith.constant 0 : index
    %10 = vector.load %arg9[%c0_6, %c0_7] : memref<16x256xbf16, #tpu.memory_space<vmem>>, vector<16x256xbf16>
    tpu.vector_store %arg9[%c0_6, %c0_7], %9 {strides = array<i32>} : memref<16x256xbf16, #tpu.memory_space<vmem>>, vector<16x256xbf16>,
    return
  }
  func.func @transform_0(%arg0: i32, %arg1: i32) -> (i32, i32) {
    %c0_i32 = arith.constant 0 : i32
    %c0_i32_0 = arith.constant 0 : i32
    return %arg0, %c0_i32 : i32, i32
  }
  func.func @transform_1(%arg0: i32, %arg1: i32) -> (i32, i32) {
    %c0_i32 = arith.constant 0 : i32
    %c0_i32_0 = arith.constant 0 : i32
    %c0_i32_1 = arith.constant 0 : i32
    return %c0_i32, %c0_i32_0 : i32, i32
  }
  func.func @transform_2(%arg0: i32, %arg1: i32) -> (i32, i32) {
    %c0_i32 = arith.constant 0 : i32
    %c0_i32_0 = arith.constant 0 : i32
    %c0_i32_1 = arith.constant 0 : i32
    return %c0_i32, %c0_i32_0 : i32, i32
  }
  func.func @transform_3(%arg0: i32, %arg1: i32) -> (i32, i32) {
    %c0_i32 = arith.constant 0 : i32
    %c0_i32_0 = arith.constant 0 : i32
    %c0_i32_1 = arith.constant 0 : i32
    return %c0_i32, %c0_i32_0 : i32, i32
  }
  func.func @transform_4(%arg0: i32, %arg1: i32) -> (i32, i32) {
    %c0_i32 = arith.constant 0 : i32
    %c0_i32_0 = arith.constant 0 : i32
    %c0_i32_1 = arith.constant 0 : i32
    return %c0_i32, %c0_i32_0 : i32, i32
  }
  func.func @transform_5(%arg0: i32, %arg1: i32) -> (i32, i32) {
    %c0_i32 = arith.constant 0 : i32
    %c0_i32_0 = arith.constant 0 : i32
    return %c0_i32, %arg1 : i32, i32
  }
  func.func @transform_6(%arg0: i32, %arg1: i32) -> (i32, i32) {
    %c0_i32 = arith.constant 0 : i32
    %c0_i32_0 = arith.constant 0 : i32
    return %c0_i32, %arg1 : i32, i32
  }
  func.func @transform_7(%arg0: i32, %arg1: i32) -> (i32, i32) {
    %c0_i32 = arith.constant 0 : i32
    return %arg0, %arg1 : i32, i32
  }
}

module attributes {stable_mosaic.version = 11 : i64} {
  func.func @_lm_head_kernel(%arg0: i32, %arg1: i32, %arg2: memref<16x128xbf16, #tpu.memory_space<vmem>>, %arg3: memref<128x128xbf16, #tpu.memory_space<vmem>>, %arg4: memref<1x128xf32, #tpu.memory_space<vmem>>, %arg5: memref<1x128xf32, #tpu.memory_space<vmem>>, %arg6: memref<1x128xf32, #tpu.memory_space<vmem>>, %arg7: memref<128x256xbf16, #tpu.memory_space<vmem>>, %arg8: memref<1x256xf32, #tpu.memory_space<vmem>>, %arg9: memref<16x256xbf16, #tpu.memory_space<vmem>>, %arg10: memref<16x128xbf16, #tpu.memory_space<vmem>>) attributes {dimension_semantics = [#tpu.dimension_semantics<parallel>, #tpu.dimension_semantics<arbitrary>], iteration_bounds = array<i64: 1, 1>, scalar_prefetch = 0 : i64, scratch_operands = 1 : i64, tpu.core_type = #tpu.core_type<tc>, window_params = [{transform_indices = @transform_0, window_bounds = array<i64: 16, 128>}, {pipeline_mode = #tpu.pipeline_mode<synchronous>, transform_indices = @transform_1, window_bounds = array<i64: 128, 128>}, {pipeline_mode = #tpu.pipeline_mode<synchronous>, transform_indices = @transform_2, window_bounds = array<i64: 1, 128>}, {pipeline_mode = #tpu.pipeline_mode<synchronous>, transform_indices = @transform_3, window_bounds = array<i64: 1, 128>}, {pipeline_mode = #tpu.pipeline_mode<synchronous>, transform_indices = @transform_4, window_bounds = array<i64: 1, 128>}, {transform_indices = @transform_5, window_bounds = array<i64: 128, 256>}, {transform_indices = @transform_6, window_bounds = array<i64: 1, 256>}, {transform_indices = @transform_7, window_bounds = array<i64: 16, 256>}]} {
    %c0_i32 = arith.constant 0 : i32
    %0 = arith.cmpi eq, %arg1, %c0_i32 : i32
    %1 = arith.extui %0 : i1 to i32
    %c0_i32_0 = arith.constant 0 : i32
    %2 = arith.cmpi ne, %1, %c0_i32_0 : i32
    scf.if %2 {
      %c0_8 = arith.constant 0 : index
      %c0_9 = arith.constant 0 : index
      %11 = vector.load %arg2[%c0_8, %c0_9] : memref<16x128xbf16, #tpu.memory_space<vmem>>, vector<16x128xbf16>
      %c0_10 = arith.constant 0 : index
      %c0_11 = arith.constant 0 : index
      %12 = vector.load %arg3[%c0_10, %c0_11] : memref<128x128xbf16, #tpu.memory_space<vmem>>, vector<128x128xbf16>
      %cst_12 = arith.constant dense<0.000000e+00> : vector<16x128xf32>
      %13 = tpu.matmul %11, %12, %cst_12 {dimension_numbers = #tpu.dot_dimension_numbers<[1], [0], [0], [1], [0, 0, 1, 1], [], []>} : vector<16x128xbf16>, vector<128x128xbf16>, vector<16x128xf32> -> vector<16x128xf32>
      %c0_13 = arith.constant 0 : index
      %c0_14 = arith.constant 0 : index
      %14 = vector.load %arg4[%c0_13, %c0_14] : memref<1x128xf32, #tpu.memory_space<vmem>>, vector<1x128xf32>
      %15 = vector.broadcast %14 : vector<1x128xf32> to vector<16x128xf32>
      %16 = arith.addf %13, %15 : vector<16x128xf32>
      %cst_15 = arith.constant 5.000000e-01 : f32
      %17 = vector.broadcast %cst_15 : f32 to vector<16x128xf32>
      %18 = arith.mulf %17, %16 : vector<16x128xf32>
      %cst_16 = arith.constant 0.707106769 : f32
      %19 = vector.broadcast %cst_16 : f32 to vector<16x128xf32>
      %20 = arith.mulf %16, %19 : vector<16x128xf32>
      %21 = math.erf %20 : vector<16x128xf32>
      %cst_17 = arith.constant 1.000000e+00 : f32
      %22 = vector.broadcast %cst_17 : f32 to vector<16x128xf32>
      %23 = arith.addf %22, %21 : vector<16x128xf32>
      %24 = arith.mulf %18, %23 : vector<16x128xf32>
      %cst_18 = arith.constant dense<0.000000e+00> : vector<16xf32>
      %25 = vector.multi_reduction <add>, %24, %cst_18 [1] : vector<16x128xf32> to vector<16xf32>
      %26 = vector.shape_cast %25 : vector<16xf32> to vector<16x1xf32>
      %cst_19 = arith.constant 1.280000e+02 : f32
      %27 = vector.broadcast %cst_19 : f32 to vector<16x1xf32>
      %28 = arith.divf %26, %27 : vector<16x1xf32>
      %29 = vector.broadcast %28 : vector<16x1xf32> to vector<16x128xf32>
      %30 = arith.subf %24, %29 : vector<16x128xf32>
      %31 = arith.mulf %30, %30 : vector<16x128xf32>
      %cst_20 = arith.constant dense<0.000000e+00> : vector<16xf32>
      %32 = vector.multi_reduction <add>, %31, %cst_20 [1] : vector<16x128xf32> to vector<16xf32>
      %33 = vector.shape_cast %32 : vector<16xf32> to vector<16x1xf32>
      %cst_21 = arith.constant 1.280000e+02 : f32
      %34 = vector.broadcast %cst_21 : f32 to vector<16x1xf32>
      %35 = arith.divf %33, %34 : vector<16x1xf32>
      %cst_22 = arith.constant 9.99999974E-6 : f32
      %36 = vector.broadcast %cst_22 : f32 to vector<16x1xf32>
      %37 = arith.addf %35, %36 : vector<16x1xf32>
      %38 = math.rsqrt %37 : vector<16x1xf32>
      %39 = vector.broadcast %38 : vector<16x1xf32> to vector<16x128xf32>
      %40 = arith.mulf %30, %39 : vector<16x128xf32>
      %c0_23 = arith.constant 0 : index
      %c0_24 = arith.constant 0 : index
      %41 = vector.load %arg5[%c0_23, %c0_24] : memref<1x128xf32, #tpu.memory_space<vmem>>, vector<1x128xf32>
      %42 = vector.broadcast %41 : vector<1x128xf32> to vector<16x128xf32>
      %43 = arith.mulf %40, %42 : vector<16x128xf32>
      %c0_25 = arith.constant 0 : index
      %c0_26 = arith.constant 0 : index
      %44 = vector.load %arg6[%c0_25, %c0_26] : memref<1x128xf32, #tpu.memory_space<vmem>>, vector<1x128xf32>
      %45 = vector.broadcast %44 : vector<1x128xf32> to vector<16x128xf32>
      %46 = arith.addf %43, %45 : vector<16x128xf32>
      %47 = arith.truncf %46 : vector<16x128xf32> to vector<16x128xbf16>
      %c0_27 = arith.constant 0 : index
      %c0_28 = arith.constant 0 : index
      %48 = vector.load %arg10[%c0_27, %c0_28] : memref<16x128xbf16, #tpu.memory_space<vmem>>, vector<16x128xbf16>
      tpu.vector_store %arg10[%c0_27, %c0_28], %47 {strides = array<i32>} : memref<16x128xbf16, #tpu.memory_space<vmem>>, vector<16x128xbf16>,
    } else {
    }
    %c0 = arith.constant 0 : index
    %c0_1 = arith.constant 0 : index
    %3 = vector.load %arg10[%c0, %c0_1] : memref<16x128xbf16, #tpu.memory_space<vmem>>, vector<16x128xbf16>
    %c0_2 = arith.constant 0 : index
    %c0_3 = arith.constant 0 : index
    %4 = vector.load %arg7[%c0_2, %c0_3] : memref<128x256xbf16, #tpu.memory_space<vmem>>, vector<128x256xbf16>
    %cst = arith.constant dense<0.000000e+00> : vector<16x256xf32>
    %5 = tpu.matmul %3, %4, %cst {dimension_numbers = #tpu.dot_dimension_numbers<[1], [0], [0], [1], [0, 0, 1, 1], [], []>} : vector<16x128xbf16>, vector<128x256xbf16>, vector<16x256xf32> -> vector<16x256xf32>
    %c0_4 = arith.constant 0 : index
    %c0_5 = arith.constant 0 : index
    %6 = vector.load %arg8[%c0_4, %c0_5] : memref<1x256xf32, #tpu.memory_space<vmem>>, vector<1x256xf32>
    %7 = vector.broadcast %6 : vector<1x256xf32> to vector<16x256xf32>
    %8 = arith.addf %5, %7 : vector<16x256xf32>
    %9 = arith.truncf %8 : vector<16x256xf32> to vector<16x256xbf16>
    %c0_6 = arith.constant 0 : index
    %c0_7 = arith.constant 0 : index
    %10 = vector.load %arg9[%c0_6, %c0_7] : memref<16x256xbf16, #tpu.memory_space<vmem>>, vector<16x256xbf16>
    tpu.vector_store %arg9[%c0_6, %c0_7], %9 {strides = array<i32>} : memref<16x256xbf16, #tpu.memory_space<vmem>>, vector<16x256xbf16>,
    return
  }
  func.func @transform_0(%arg0: i32, %arg1: i32) -> (i32, i32) {
    %c0_i32 = arith.constant 0 : i32
    %c0_i32_0 = arith.constant 0 : i32
    return %arg0, %c0_i32 : i32, i32
  }
  func.func @transform_1(%arg0: i32, %arg1: i32) -> (i32, i32) {
    %c0_i32 = arith.constant 0 : i32
    %c0_i32_0 = arith.constant 0 : i32
    %c0_i32_1 = arith.constant 0 : i32
    return %c0_i32, %c0_i32_0 : i32, i32
  }
  func.func @transform_2(%arg0: i32, %arg1: i32) -> (i32, i32) {
    %c0_i32 = arith.constant 0 : i32
    %c0_i32_0 = arith.constant 0 : i32
    %c0_i32_1 = arith.constant 0 : i32
    return %c0_i32, %c0_i32_0 : i32, i32
  }
  func.func @transform_3(%arg0: i32, %arg1: i32) -> (i32, i32) {
    %c0_i32 = arith.constant 0 : i32
    %c0_i32_0 = arith.constant 0 : i32
    %c0_i32_1 = arith.constant 0 : i32
    return %c0_i32, %c0_i32_0 : i32, i32
  }
  func.func @transform_4(%arg0: i32, %arg1: i32) -> (i32, i32) {
    %c0_i32 = arith.constant 0 : i32
    %c0_i32_0 = arith.constant 0 : i32
    %c0_i32_1 = arith.constant 0 : i32
    return %c0_i32, %c0_i32_0 : i32, i32
  }
  func.func @transform_5(%arg0: i32, %arg1: i32) -> (i32, i32) {
    %c0_i32 = arith.constant 0 : i32
    %c0_i32_0 = arith.constant 0 : i32
    return %c0_i32, %arg1 : i32, i32
  }
  func.func @transform_6(%arg0: i32, %arg1: i32) -> (i32, i32) {
    %c0_i32 = arith.constant 0 : i32
    %c0_i32_0 = arith.constant 0 : i32
    return %c0_i32, %arg1 : i32, i32
  }
  func.func @transform_7(%arg0: i32, %arg1: i32) -> (i32, i32) {
    %c0_i32 = arith.constant 0 : i32
    return %arg0, %arg1 : i32, i32
  }
}

</mosaic_0001>

<bundles_post_ra>
// kernel: tpu_custom_call.1
= control target key start
LH: loop header
LB: loop body
LE: loop exit
PB: predicated region body
PF: predicated region fallthrough
CT: control target
= control target key end

     0   :  { %12 = vsyncpa [#allocation4], 0  ;;  %s761_s0 = inlined_call_operand.hbm [shape: bf16[16,128], index: 0, kind: input, shape index: {}]   ;;  %s762_s1 = inlined_call_operand.hbm [shape: bf16[128,128], index: 1, kind: input, shape index: {}]   ;;  %s763_s2 = inlined_call_operand.vmem [shape: f32[1,128], index: 2, kind: input, shape index: {}]   ;;  %s764_s3 = inlined_call_operand.vmem [shape: f32[1,128], index: 3, kind: input, shape index: {}]   ;;  %s765_s4 = inlined_call_operand.vmem [shape: f32[1,128], index: 4, kind: input, shape index: {}]   ;;  %s766_s5 = inlined_call_operand.hbm [shape: bf16[128,256], index: 5, kind: input, shape index: {}]   ;;  %s767_s6 = inlined_call_operand.vmem [shape: f32[1,256], index: 6, kind: input, shape index: {}]   ;;  %s768_s7 = inlined_call_operand.hbm [shape: bf16[16,256], index: 7, kind: output, shape index: {}]  }
   0x1   :  { %13 = vsyncpa [#allocation7], 0 }
   0x2   :  { %14 = vsyncpa [#allocation5], 0  ;;  %s637_s24 = smov [#allocation6]   ;;  %s638_s26 = smov [#allocation3]  }
   0x3   :  { %s32_s25 = sshll.u32 %s637_s24, 4  ;;  %s20_s27 = sshll.u32 %s638_s26, 4  ;;  %s33_s25 = int_to_ptr.vmem [resolvable:$true] %s32_s25  ;;  %s688_s27 = int_to_ptr.vmem [resolvable:$true] %s20_s27 }
   0x4   :  { %s543_s30 = scalar_lea.hbm %s762_s1, 1024 }
   0x5   :  { %p544_p0 = scmp.ne.s32.totalorder %s762_s1, %s543_s30  ;;  %p547_p1 = scmp.lt.u32.totalorder %s543_s30, %s762_s1 }
   0x7   :  { %p549_p2 = pnand %p547_p1, %p544_p0 }
   0x9   :  { %552 = shalt.err (!%p549_p2)
}
   0xa   :  { %s553_s12 = scalar_lea.vmem %s33_s25, 1024  ;;  %p558_p4 = scmp.lt.s32.totalorder %s33_s25, %s33_s25 }
   0xb   :  { %p554_p3 = scmp.ne.s32.totalorder %s33_s25, %s553_s12  ;;  %p559_p5 = scmp.lt.s32.totalorder %s553_s12, %s553_s12 }
   0xd   :  { %p560_p6 = por %p559_p5, %p558_p4 }
   0xf   :  { %p561_p7 = pnand %p560_p6, %p554_p3 }
  0x11   :  { %564 = shalt.err (!%p561_p7)
}
  0x12   :  { %s639_s13 = smov 64   ;;  %s640_s14 = smov 4  }
  0x13   :  { %38 = dma.hbm_to_vmem [thread:$0]  %s762_s1, 1024, %s33_s25, [#allocation7], %s639_s13, %s639_s13, %s640_s14  }
  0x14   :  { %s565_s19 = scalar_lea.hbm %s761_s0, 128 }
  0x15   :  { %p566_p8 = scmp.ne.s32.totalorder %s761_s0, %s565_s19  ;;  %p569_p9 = scmp.lt.u32.totalorder %s565_s19, %s761_s0 }
  0x17   :  { %p571_p10 = pnand %p569_p9, %p566_p8 }
  0x19   :  { %574 = shalt.err (!%p571_p10)
}
  0x1a   :  { %s575_s24 = scalar_lea.vmem %s688_s27, 128  ;;  %p580_p12 = scmp.lt.s32.totalorder %s688_s27, %s688_s27 }
  0x1b   :  { %p576_p11 = scmp.ne.s32.totalorder %s688_s27, %s575_s24  ;;  %p581_p13 = scmp.lt.s32.totalorder %s575_s24, %s575_s24 }
  0x1d   :  { %p582_p0 = por %p581_p13, %p580_p12 }
  0x1f   :  { %p583_p1 = pnand %p582_p0, %p576_p11 }
  0x21   :  { %586 = shalt.err (!%p583_p1)
}
  0x22   :  { %26 = dma.hbm_to_vmem [thread:$0]  %s761_s0, 128, %s688_s27, [#allocation4], %s639_s13, %s639_s13, %s640_s14  }
  0x23   :  { %s641_s26 = smov [#allocation8]   ;;  %s587_s8 = scalar_lea.hbm %s766_s5, 2048 }
  0x24   :  { %s50_s28 = sshll.u32 %s641_s26, 4  ;;  %p588_p2 = scmp.ne.s32.totalorder %s766_s5, %s587_s8  ;;  %s51_s28 = int_to_ptr.vmem [resolvable:$true] %s50_s28 }
  0x25   :  { %p591_p3 = scmp.lt.u32.totalorder %s587_s8, %s766_s5 }
  0x27   :  { %p593_p4 = pnand %p591_p3, %p588_p2 }
  0x29   :  { %596 = shalt.err (!%p593_p4)
}
  0x2a   :  { %s597_s15 = scalar_lea.vmem %s51_s28, 2048  ;;  %p602_p6 = scmp.lt.s32.totalorder %s51_s28, %s51_s28 }
  0x2b   :  { %p598_p5 = scmp.ne.s32.totalorder %s51_s28, %s597_s15  ;;  %p603_p7 = scmp.lt.s32.totalorder %s597_s15, %s597_s15 }
  0x2d   :  { %p604_p8 = por %p603_p7, %p602_p6 }
  0x2f   :  { %p605_p9 = pnand %p604_p8, %p598_p5 }
  0x31   :  { %608 = shalt.err (!%p605_p9)
}
  0x32   :  { %s642_s0 = smov 128   ;;  %s643_s27 = smov 8  }
  0x33   :  { %56 = dma.hbm_to_vmem [thread:$0]  %s766_s5, 2048, %s51_s28, [#allocation7], %s642_s0, %s642_s0, %s643_s27  }
  0x34   :  { %631 = dma.done.wait [#allocation4], 128  }
  0x35   :  { %632 = vsyncadd [#allocation4], 4294967168 }
  0x36   :  { %633 = dma.done.wait [#allocation7], 3072  }
  0x37   :  { %634 = vsyncadd [#allocation7], 4294964224  ;;  %v644_v0 = vmov 0.0   ;;  %vm645_vm0 = vmmov 0   ;;  %v502_v1 = vld [vmem:[#allocation6] sm:$0xff]   ;;  %v503_v2 = vld [vmem:[#allocation6 + $0x8] sm:$0xff]  }
  0x38   :  { %471 = vmatprep.subr.bf16.mxu0 %v644_v0  ;;  %487 = vmatprep.mubr.msk.bf16.mxu0 %vm645_vm0, %v644_v0  ;;  %v504_v3 = vld [vmem:[#allocation6 + $0x10] sm:$0xff]   ;;  %v505_v4 = vld [vmem:[#allocation6 + $0x18] sm:$0xff]   ;;  %v506_v5 = vld [vmem:[#allocation6 + $0x20] sm:$0xff]   ;;  %v646_v46 = vmov 0  }
  0x39   :  { %472 = vmatpush3.bf16.msra.mxu0 %v502_v1  ;;  %v507_v6 = vld [vmem:[#allocation6 + $0x28] sm:$0xff]   ;;  %v508_v7 = vld [vmem:[#allocation6 + $0x30] sm:$0xff]   ;;  %v509_v8 = vld [vmem:[#allocation6 + $0x38] sm:$0xff]   ;;  %387 = vmatprep.mubr.bf16.mxu1 %v646_v46 }
  0x3a   :  { %473 = vmatprep.subr.bf16.mxu0 %v644_v0  ;;  %v510_v9 = vld [vmem:[#allocation3] sm:$0xff]   ;;  %v511_v27 = vld [vmem:[#allocation8 + $0x4] ss:$8 sps:$4 sm:$0xff]   ;;  %v513_v28 = vld [vmem:[#allocation8] ss:$8 sps:$4 sm:$0xff]  }
  0x3b   :  { %v430_v10 = vld [vmem:[%s763_s2] ss:$0 sm:$0xff]  ;;  %v514_v29 = vld [vmem:[#allocation8 + $0x14] ss:$8 sps:$4 sm:$0xff]   ;;  %355 = vmatprep.subr.bf16.mxu1 %v511_v27  ;;  %v517_v39 = vld [vmem:[#allocation8 + $0x24] ss:$8 sps:$4 sm:$0xff]  }
  0x3c   :  { %356 = vmatpush1.bf16.msra.mxu1 %v513_v28  ;;  %v516_v38 = vld [vmem:[#allocation8 + $0x10] ss:$8 sps:$4 sm:$0xff]   ;;  %v519_v40 = vld [vmem:[#allocation8 + $0x20] ss:$8 sps:$4 sm:$0xff]   ;;  %v520_v41 = vld [vmem:[#allocation8 + $0x34] ss:$8 sps:$4 sm:$0xff]  }
  0x3d   :  { %474 = vmatpush3.bf16.msra.mxu0 %v503_v2  ;;  %357 = vmatprep.subr.bf16.mxu1 %v514_v29  ;;  %v522_v42 = vld [vmem:[#allocation8 + $0x30] ss:$8 sps:$4 sm:$0xff]   ;;  %v523_v43 = vld [vmem:[#allocation8 + $0x44] ss:$8 sps:$4 sm:$0xff]   ;;  %v525_v44 = vld [vmem:[#allocation8 + $0x40] ss:$8 sps:$4 sm:$0xff]  }
  0x3e   :  { %475 = vmatprep.subr.bf16.mxu0 %v644_v0  ;;  %v526_v45 = vld [vmem:[#allocation8 + $0x54] ss:$8 sps:$4 sm:$0xff]   ;;  %v528_v47 = vld [vmem:[#allocation8 + $0x50] ss:$8 sps:$4 sm:$0xff]   ;;  %v529_v48 = vld [vmem:[#allocation8 + $0x64] ss:$8 sps:$4 sm:$0xff]  }
  0x3f   :  { %v531_v49 = vld [vmem:[#allocation8 + $0x60] ss:$8 sps:$4 sm:$0xff]   ;;  %v532_v50 = vld [vmem:[#allocation8 + $0x74] ss:$8 sps:$4 sm:$0xff]   ;;  %v534_v51 = vld [vmem:[#allocation8 + $0x70] ss:$8 sps:$4 sm:$0xff]  }
  0x40   :  { %358 = vmatpush1.bf16.msra.mxu1 %v516_v38  ;;  %v440_v60 = vld [vmem:[%s764_s3] ss:$0 sm:$0xff]  ;;  %s647_s3 = smov [#allocation9]  }
  0x41   :  { %476 = vmatpush3.bf16.msra.mxu0 %v504_v3  ;;  %359 = vmatprep.subr.bf16.mxu1 %v517_v39 }
  0x42   :  { %477 = vmatprep.subr.bf16.mxu0 %v644_v0 }
  0x44   :  { %360 = vmatpush1.bf16.msra.mxu1 %v519_v40 }
  0x45   :  { %478 = vmatpush3.bf16.msra.mxu0 %v505_v4  ;;  %361 = vmatprep.subr.bf16.mxu1 %v520_v41 }
  0x46   :  { %479 = vmatprep.subr.bf16.mxu0 %v644_v0 }
  0x48   :  { %362 = vmatpush1.bf16.msra.mxu1 %v522_v42 }
  0x49   :  { %480 = vmatpush3.bf16.msra.mxu0 %v506_v5  ;;  %363 = vmatprep.subr.bf16.mxu1 %v523_v43  ;;  %v265_v5 = vlaneseq }
  0x4a   :  { %481 = vmatprep.subr.bf16.mxu0 %v644_v0 }
  0x4c   :  { %364 = vmatpush1.bf16.msra.mxu1 %v525_v44 }
  0x4d   :  { %482 = vmatpush3.bf16.msra.mxu0 %v507_v6  ;;  %365 = vmatprep.subr.bf16.mxu1 %v526_v45  ;;  %v266_v6 = vshrl.u32 %v265_v5, 7 }
  0x4e   :  { %483 = vmatprep.subr.bf16.mxu0 %v644_v0 }
  0x50   :  { %366 = vmatpush1.bf16.msra.mxu1 %v528_v47 }
  0x51   :  { %484 = vmatpush3.bf16.msra.mxu0 %v508_v7  ;;  %367 = vmatprep.subr.bf16.mxu1 %v529_v48  ;;  %v267_v7 = vsub.s32 0, %v266_v6 }
  0x52   :  { %485 = vmatprep.subr.bf16.mxu0 %v644_v0  ;;  %v441_v0 = vld [vmem:[%s765_s4] ss:$0 sm:$0xff]  ;;  %s417_s4 = sshll.u32 %s647_s3, 4  ;;  %s418_s4 = int_to_ptr.vmem [resolvable:$true] %s417_s4 }
  0x53   :  { %s609_s22 = scalar_lea.vmem %s418_s4, 256  ;;  %p614_p11 = scmp.lt.s32.totalorder %s418_s4, %s418_s4 }
  0x54   :  { %368 = vmatpush1.bf16.msra.mxu1 %v531_v49  ;;  %p610_p10 = scmp.ne.s32.totalorder %s418_s4, %s609_s22  ;;  %p615_p12 = scmp.lt.s32.totalorder %s609_s22, %s609_s22 }
  0x55   :  { %486 = vmatpush3.bf16.msra.mxu0 %v509_v8  ;;  %369 = vmatprep.subr.bf16.mxu1 %v532_v50  ;;  %v263_v8 = vld [vmem:[%s767_s6] sm:$0x3] }
  0x56   :  { %p616_p13 = por %p615_p12, %p614_p11 }
  0x58   :  { %488 = vmatmul.mubr.bf16.vlgmr.msra.gmra.mrb[0].mxu0 %v510_v9  ;;  %370 = vmatpush1.bf16.msra.mxu1 %v534_v51  ;;  %v271_v9 = vsub.s32 1, %v266_v6  ;;  %p617_p0 = pnand %p616_p13, %p610_p10 }
 0x12b   :  { %v186_v11 = vpop.f32.mrb[0].mxu0 }
 0x12c   :  { %v187_v12 = vadd.f32 %v430_v10, %v186_v11  ;;  %v489_v13 = vpop.f32.mrb[1].mxu0  ;;  %v272_v11 = vrot.slane %v263_v8, %v271_v9 }
 0x12d   :  { %v189_v14 = vpop.f32.mrb[2].mxu0 }
 0x12e   :  { %v195_v15 = vmul.f32 0.70710677, %v187_v12  ;;  %v190_v16 = vadd.f32 %v430_v10, %v189_v14  ;;  %v490_v17 = vpop.f32.mrb[3].mxu0  ;;  %v193_v20 = vmul.f32 0.5, %v187_v12  ;;  %v268_v10 = vrot.slane %v263_v8, %v267_v7 }
 0x130   :  { %535 = verf.f32 %v195_v15  ;;  %v196_v18 = vmul.f32 0.70710677, %v190_v16  ;;  %v194_v25 = vmul.f32 0.5, %v190_v16 }
 0x132   :  { %537 = verf.f32 %v196_v18 }
 0x13a   :  { %v536_v19 = vpop.eup %535 }
 0x13b   :  { %v199_v21 = vadd.f32 1.0, %v536_v19 }
 0x13c   :  { %v538_v22 = vpop.eup %537 }
 0x13d   :  { %v201_v23 = vmul.f32 %v199_v21, %v193_v20  ;;  %v200_v24 = vadd.f32 1.0, %v538_v22 }
 0x13f   :  { %203 = vadd.xlane.f32.xlu0 %v201_v23  ;;  %v202_v26 = vmul.f32 %v200_v24, %v194_v25 }
 0x143   :  { %205 = vadd.xlane.f32.xlu0 %v202_v26 }
 0x1cc   :  { %v204_v30 = vpop.xlane.xlu0 %203 }
 0x1cd   :  { %v208_v31 = vmul.f32 0.0078125, %v204_v30 }
 0x1cf   :  { %v210_v32 = vsub.f32 %v201_v23, %v208_v31 }
 0x1d0   :  { %v206_v33 = vpop.xlane.xlu0 %205 }
 0x1d1   :  { %v209_v34 = vmul.f32 0.0078125, %v206_v33  ;;  %v212_v35 = vmul.f32 %v210_v32, %v210_v32 }
 0x1d3   :  { %v211_v36 = vsub.f32 %v202_v26, %v209_v34  ;;  %214 = vadd.xlane.f32.xlu1 %v212_v35 }
 0x1d5   :  { %v213_v37 = vmul.f32 %v211_v36, %v211_v36 }
 0x1d7   :  { %216 = vadd.xlane.f32.xlu1 %v213_v37 }
 0x260   :  { %v215_v52 = vpop.xlane.xlu1 %214 }
 0x261   :  { %v218_v53 = vmul.f32 0.0078125, %v215_v52 }
 0x263   :  { %v220_v54 = vadd.f32 1e-05, %v218_v53 }
 0x264   :  { %v217_v55 = vpop.xlane.xlu1 %216 }
 0x265   :  { %539 = vrsqrt.f32 %v220_v54  ;;  %v219_v56 = vmul.f32 0.0078125, %v217_v55 }
 0x267   :  { %v221_v57 = vadd.f32 1e-05, %v219_v56 }
 0x269   :  { %541 = vrsqrt.f32 %v221_v57 }
 0x26f   :  { %v540_v58 = vpop.eup %539 }
 0x270   :  { %v224_v59 = vmul.f32 %v540_v58, %v210_v32 }
 0x272   :  { %v233_v63 = vmul.f32 %v440_v60, %v224_v59 }
 0x273   :  { %v542_v61 = vpop.eup %541 }
 0x274   :  { %v225_v62 = vmul.f32 %v542_v61, %v211_v36  ;;  %v242_v2 = vadd.f32 %v441_v0, %v233_v63 }
 0x276   :  { %v234_v1 = vmul.f32 %v440_v60, %v225_v62 }
 0x278   :  { %v243_v3 = vadd.f32 %v441_v0, %v234_v1 }
 0x27a   :  { %v244_v4 = vpack.c.bf16 %v243_v3, %v242_v2 }
 0x27c   :  { %388 = vmatmul.mubr.bf16.vlgmr.msra.gmra.mrb[0].mxu1 %v244_v4 }
 0x34f   :  { %v389_v12 = vpop.f32.mrb[0].mxu1 }
 0x350   :  { %v390_v13 = vadd.f32 %v389_v12, %v268_v10  ;;  %v391_v14 = vpop.f32.mrb[1].mxu1 }
 0x351   :  { %v392_v15 = vadd.f32 %v391_v14, %v272_v11  ;;  %v393_v16 = vpop.f32.mrb[2].mxu1 }
 0x352   :  { %v394_v17 = vadd.f32 %v393_v16, %v268_v10  ;;  %v395_v18 = vpop.f32.mrb[3].mxu1 }
 0x353   :  { %v460_v19 = vpack.c.bf16 %v392_v15, %v390_v13  ;;  %v396_v20 = vadd.f32 %v395_v18, %v272_v11 }
 0x355   :  { %410 = vst [vmem:[#allocation9] sm:$0xff] %v460_v19  ;;  %v461_v21 = vpack.c.bf16 %v396_v20, %v394_v17 }
 0x357   :  { %411 = vst [vmem:[#allocation9 + $0x8] sm:$0xff] %v461_v21 }
 0x358   :  { %620 = shalt.err (!%p617_p0)
}
 0x359   :  { %s621_s24 = scalar_lea.hbm %s768_s7, 256 }
 0x35a   :  { %p622_p1 = scmp.ne.s32.totalorder %s768_s7, %s621_s24  ;;  %p625_p2 = scmp.lt.u32.totalorder %s621_s24, %s768_s7 }
 0x35c   :  { %p627_p3 = pnand %p625_p2, %p622_p1 }
 0x35e   :  { %630 = shalt.err (!%p627_p3)
}
 0x35f   :  { %423 = dma.vmem_to_hbm [thread:$0]  %s418_s4, 256, %s768_s7, [#allocation5], %s642_s0, %s642_s0, %s643_s27  }
 0x360   :  { %635 = dma.done.wait [#allocation5], 256  }
 0x361   :  { %636 = vsyncadd [#allocation5], 4294967040 }
 0x362   :  { %427 = vsyncpa [#allocation4], 1 }
 0x363   :  { %428 = vsyncpa [#allocation7], 1 }
 0x364   :  { %429 = vsyncpa [#allocation5], 1 }

// kernel: tpu_custom_call.1
= control target key start
LH: loop header
LB: loop body
LE: loop exit
PB: predicated region body
PF: predicated region fallthrough
CT: control target
= control target key end

     0   :  { %12 = vsyncpa [#allocation4], 0  ;;  %s761_s0 = inlined_call_operand.hbm [shape: bf16[16,128], index: 0, kind: input, shape index: {}]   ;;  %s762_s1 = inlined_call_operand.hbm [shape: bf16[128,128], index: 1, kind: input, shape index: {}]   ;;  %s763_s2 = inlined_call_operand.vmem [shape: f32[1,128], index: 2, kind: input, shape index: {}]   ;;  %s764_s3 = inlined_call_operand.vmem [shape: f32[1,128], index: 3, kind: input, shape index: {}]   ;;  %s765_s4 = inlined_call_operand.vmem [shape: f32[1,128], index: 4, kind: input, shape index: {}]   ;;  %s766_s5 = inlined_call_operand.hbm [shape: bf16[128,256], index: 5, kind: input, shape index: {}]   ;;  %s767_s6 = inlined_call_operand.vmem [shape: f32[1,256], index: 6, kind: input, shape index: {}]   ;;  %s768_s7 = inlined_call_operand.hbm [shape: bf16[16,256], index: 7, kind: output, shape index: {}]  }
   0x1   :  { %13 = vsyncpa [#allocation7], 0 }
   0x2   :  { %14 = vsyncpa [#allocation5], 0  ;;  %s637_s24 = smov [#allocation6]   ;;  %s638_s26 = smov [#allocation3]  }
   0x3   :  { %s32_s25 = sshll.u32 %s637_s24, 4  ;;  %s20_s27 = sshll.u32 %s638_s26, 4  ;;  %s33_s25 = int_to_ptr.vmem [resolvable:$true] %s32_s25  ;;  %s688_s27 = int_to_ptr.vmem [resolvable:$true] %s20_s27 }
   0x4   :  { %s543_s30 = scalar_lea.hbm %s762_s1, 1024 }
   0x5   :  { %p544_p0 = scmp.ne.s32.totalorder %s762_s1, %s543_s30  ;;  %p547_p1 = scmp.lt.u32.totalorder %s543_s30, %s762_s1 }
   0x7   :  { %p549_p2 = pnand %p547_p1, %p544_p0 }
   0x9   :  { %552 = shalt.err (!%p549_p2)
}
   0xa   :  { %s553_s12 = scalar_lea.vmem %s33_s25, 1024  ;;  %p558_p4 = scmp.lt.s32.totalorder %s33_s25, %s33_s25 }
   0xb   :  { %p554_p3 = scmp.ne.s32.totalorder %s33_s25, %s553_s12  ;;  %p559_p5 = scmp.lt.s32.totalorder %s553_s12, %s553_s12 }
   0xd   :  { %p560_p6 = por %p559_p5, %p558_p4 }
   0xf   :  { %p561_p7 = pnand %p560_p6, %p554_p3 }
  0x11   :  { %564 = shalt.err (!%p561_p7)
}
  0x12   :  { %s639_s13 = smov 64   ;;  %s640_s14 = smov 4  }
  0x13   :  { %38 = dma.hbm_to_vmem [thread:$0]  %s762_s1, 1024, %s33_s25, [#allocation7], %s639_s13, %s639_s13, %s640_s14  }
  0x14   :  { %s565_s19 = scalar_lea.hbm %s761_s0, 128 }
  0x15   :  { %p566_p8 = scmp.ne.s32.totalorder %s761_s0, %s565_s19  ;;  %p569_p9 = scmp.lt.u32.totalorder %s565_s19, %s761_s0 }
  0x17   :  { %p571_p10 = pnand %p569_p9, %p566_p8 }
  0x19   :  { %574 = shalt.err (!%p571_p10)
}
  0x1a   :  { %s575_s24 = scalar_lea.vmem %s688_s27, 128  ;;  %p580_p12 = scmp.lt.s32.totalorder %s688_s27, %s688_s27 }
  0x1b   :  { %p576_p11 = scmp.ne.s32.totalorder %s688_s27, %s575_s24  ;;  %p581_p13 = scmp.lt.s32.totalorder %s575_s24, %s575_s24 }
  0x1d   :  { %p582_p0 = por %p581_p13, %p580_p12 }
  0x1f   :  { %p583_p1 = pnand %p582_p0, %p576_p11 }
  0x21   :  { %586 = shalt.err (!%p583_p1)
}
  0x22   :  { %26 = dma.hbm_to_vmem [thread:$0]  %s761_s0, 128, %s688_s27, [#allocation4], %s639_s13, %s639_s13, %s640_s14  }
  0x23   :  { %s641_s26 = smov [#allocation8]   ;;  %s587_s8 = scalar_lea.hbm %s766_s5, 2048 }
  0x24   :  { %s50_s28 = sshll.u32 %s641_s26, 4  ;;  %p588_p2 = scmp.ne.s32.totalorder %s766_s5, %s587_s8  ;;  %s51_s28 = int_to_ptr.vmem [resolvable:$true] %s50_s28 }
  0x25   :  { %p591_p3 = scmp.lt.u32.totalorder %s587_s8, %s766_s5 }
  0x27   :  { %p593_p4 = pnand %p591_p3, %p588_p2 }
  0x29   :  { %596 = shalt.err (!%p593_p4)
}
  0x2a   :  { %s597_s15 = scalar_lea.vmem %s51_s28, 2048  ;;  %p602_p6 = scmp.lt.s32.totalorder %s51_s28, %s51_s28 }
  0x2b   :  { %p598_p5 = scmp.ne.s32.totalorder %s51_s28, %s597_s15  ;;  %p603_p7 = scmp.lt.s32.totalorder %s597_s15, %s597_s15 }
  0x2d   :  { %p604_p8 = por %p603_p7, %p602_p6 }
  0x2f   :  { %p605_p9 = pnand %p604_p8, %p598_p5 }
  0x31   :  { %608 = shalt.err (!%p605_p9)
}
  0x32   :  { %s642_s0 = smov 128   ;;  %s643_s27 = smov 8  }
  0x33   :  { %56 = dma.hbm_to_vmem [thread:$0]  %s766_s5, 2048, %s51_s28, [#allocation7], %s642_s0, %s642_s0, %s643_s27  }
  0x34   :  { %631 = dma.done.wait [#allocation4], 128  }
  0x35   :  { %632 = vsyncadd [#allocation4], 4294967168 }
  0x36   :  { %633 = dma.done.wait [#allocation7], 3072  }
  0x37   :  { %634 = vsyncadd [#allocation7], 4294964224  ;;  %v644_v0 = vmov 0.0   ;;  %vm645_vm0 = vmmov 0   ;;  %v502_v1 = vld [vmem:[#allocation6] sm:$0xff]   ;;  %v503_v2 = vld [vmem:[#allocation6 + $0x8] sm:$0xff]  }
  0x38   :  { %471 = vmatprep.subr.bf16.mxu0 %v644_v0  ;;  %487 = vmatprep.mubr.msk.bf16.mxu0 %vm645_vm0, %v644_v0  ;;  %v504_v3 = vld [vmem:[#allocation6 + $0x10] sm:$0xff]   ;;  %v505_v4 = vld [vmem:[#allocation6 + $0x18] sm:$0xff]   ;;  %v506_v5 = vld [vmem:[#allocation6 + $0x20] sm:$0xff]   ;;  %v646_v46 = vmov 0  }
  0x39   :  { %472 = vmatpush3.bf16.msra.mxu0 %v502_v1  ;;  %v507_v6 = vld [vmem:[#allocation6 + $0x28] sm:$0xff]   ;;  %v508_v7 = vld [vmem:[#allocation6 + $0x30] sm:$0xff]   ;;  %v509_v8 = vld [vmem:[#allocation6 + $0x38] sm:$0xff]   ;;  %387 = vmatprep.mubr.bf16.mxu1 %v646_v46 }
  0x3a   :  { %473 = vmatprep.subr.bf16.mxu0 %v644_v0  ;;  %v510_v9 = vld [vmem:[#allocation3] sm:$0xff]   ;;  %v511_v27 = vld [vmem:[#allocation8 + $0x4] ss:$8 sps:$4 sm:$0xff]   ;;  %v513_v28 = vld [vmem:[#allocation8] ss:$8 sps:$4 sm:$0xff]  }
  0x3b   :  { %v430_v10 = vld [vmem:[%s763_s2] ss:$0 sm:$0xff]  ;;  %v514_v29 = vld [vmem:[#allocation8 + $0x14] ss:$8 sps:$4 sm:$0xff]   ;;  %355 = vmatprep.subr.bf16.mxu1 %v511_v27  ;;  %v517_v39 = vld [vmem:[#allocation8 + $0x24] ss:$8 sps:$4 sm:$0xff]  }
  0x3c   :  { %356 = vmatpush1.bf16.msra.mxu1 %v513_v28  ;;  %v516_v38 = vld [vmem:[#allocation8 + $0x10] ss:$8 sps:$4 sm:$0xff]   ;;  %v519_v40 = vld [vmem:[#allocation8 + $0x20] ss:$8 sps:$4 sm:$0xff]   ;;  %v520_v41 = vld [vmem:[#allocation8 + $0x34] ss:$8 sps:$4 sm:$0xff]  }
  0x3d   :  { %474 = vmatpush3.bf16.msra.mxu0 %v503_v2  ;;  %357 = vmatprep.subr.bf16.mxu1 %v514_v29  ;;  %v522_v42 = vld [vmem:[#allocation8 + $0x30] ss:$8 sps:$4 sm:$0xff]   ;;  %v523_v43 = vld [vmem:[#allocation8 + $0x44] ss:$8 sps:$4 sm:$0xff]   ;;  %v525_v44 = vld [vmem:[#allocation8 + $0x40] ss:$8 sps:$4 sm:$0xff]  }
  0x3e   :  { %475 = vmatprep.subr.bf16.mxu0 %v644_v0  ;;  %v526_v45 = vld [vmem:[#allocation8 + $0x54] ss:$8 sps:$4 sm:$0xff]   ;;  %v528_v47 = vld [vmem:[#allocation8 + $0x50] ss:$8 sps:$4 sm:$0xff]   ;;  %v529_v48 = vld [vmem:[#allocation8 + $0x64] ss:$8 sps:$4 sm:$0xff]  }
  0x3f   :  { %v531_v49 = vld [vmem:[#allocation8 + $0x60] ss:$8 sps:$4 sm:$0xff]   ;;  %v532_v50 = vld [vmem:[#allocation8 + $0x74] ss:$8 sps:$4 sm:$0xff]   ;;  %v534_v51 = vld [vmem:[#allocation8 + $0x70] ss:$8 sps:$4 sm:$0xff]  }
  0x40   :  { %358 = vmatpush1.bf16.msra.mxu1 %v516_v38  ;;  %v440_v60 = vld [vmem:[%s764_s3] ss:$0 sm:$0xff]  ;;  %s647_s3 = smov [#allocation9]  }
  0x41   :  { %476 = vmatpush3.bf16.msra.mxu0 %v504_v3  ;;  %359 = vmatprep.subr.bf16.mxu1 %v517_v39 }
  0x42   :  { %477 = vmatprep.subr.bf16.mxu0 %v644_v0 }
  0x44   :  { %360 = vmatpush1.bf16.msra.mxu1 %v519_v40 }
  0x45   :  { %478 = vmatpush3.bf16.msra.mxu0 %v505_v4  ;;  %361 = vmatprep.subr.bf16.mxu1 %v520_v41 }
  0x46   :  { %479 = vmatprep.subr.bf16.mxu0 %v644_v0 }
  0x48   :  { %362 = vmatpush1.bf16.msra.mxu1 %v522_v42 }
  0x49   :  { %480 = vmatpush3.bf16.msra.mxu0 %v506_v5  ;;  %363 = vmatprep.subr.bf16.mxu1 %v523_v43  ;;  %v265_v5 = vlaneseq }
  0x4a   :  { %481 = vmatprep.subr.bf16.mxu0 %v644_v0 }
  0x4c   :  { %364 = vmatpush1.bf16.msra.mxu1 %v525_v44 }
  0x4d   :  { %482 = vmatpush3.bf16.msra.mxu0 %v507_v6  ;;  %365 = vmatprep.subr.bf16.mxu1 %v526_v45  ;;  %v266_v6 = vshrl.u32 %v265_v5, 7 }
  0x4e   :  { %483 = vmatprep.subr.bf16.mxu0 %v644_v0 }
  0x50   :  { %366 = vmatpush1.bf16.msra.mxu1 %v528_v47 }
  0x51   :  { %484 = vmatpush3.bf16.msra.mxu0 %v508_v7  ;;  %367 = vmatprep.subr.bf16.mxu1 %v529_v48  ;;  %v267_v7 = vsub.s32 0, %v266_v6 }
  0x52   :  { %485 = vmatprep.subr.bf16.mxu0 %v644_v0  ;;  %v441_v0 = vld [vmem:[%s765_s4] ss:$0 sm:$0xff]  ;;  %s417_s4 = sshll.u32 %s647_s3, 4  ;;  %s418_s4 = int_to_ptr.vmem [resolvable:$true] %s417_s4 }
  0x53   :  { %s609_s22 = scalar_lea.vmem %s418_s4, 256  ;;  %p614_p11 = scmp.lt.s32.totalorder %s418_s4, %s418_s4 }
  0x54   :  { %368 = vmatpush1.bf16.msra.mxu1 %v531_v49  ;;  %p610_p10 = scmp.ne.s32.totalorder %s418_s4, %s609_s22  ;;  %p615_p12 = scmp.lt.s32.totalorder %s609_s22, %s609_s22 }
  0x55   :  { %486 = vmatpush3.bf16.msra.mxu0 %v509_v8  ;;  %369 = vmatprep.subr.bf16.mxu1 %v532_v50  ;;  %v263_v8 = vld [vmem:[%s767_s6] sm:$0x3] }
  0x56   :  { %p616_p13 = por %p615_p12, %p614_p11 }
  0x58   :  { %488 = vmatmul.mubr.bf16.vlgmr.msra.gmra.mrb[0].mxu0 %v510_v9  ;;  %370 = vmatpush1.bf16.msra.mxu1 %v534_v51  ;;  %v271_v9 = vsub.s32 1, %v266_v6  ;;  %p617_p0 = pnand %p616_p13, %p610_p10 }
 0x12b   :  { %v186_v11 = vpop.f32.mrb[0].mxu0 }
 0x12c   :  { %v187_v12 = vadd.f32 %v430_v10, %v186_v11  ;;  %v489_v13 = vpop.f32.mrb[1].mxu0  ;;  %v272_v11 = vrot.slane %v263_v8, %v271_v9 }
 0x12d   :  { %v189_v14 = vpop.f32.mrb[2].mxu0 }
 0x12e   :  { %v195_v15 = vmul.f32 0.70710677, %v187_v12  ;;  %v190_v16 = vadd.f32 %v430_v10, %v189_v14  ;;  %v490_v17 = vpop.f32.mrb[3].mxu0  ;;  %v193_v20 = vmul.f32 0.5, %v187_v12  ;;  %v268_v10 = vrot.slane %v263_v8, %v267_v7 }
 0x130   :  { %535 = verf.f32 %v195_v15  ;;  %v196_v18 = vmul.f32 0.70710677, %v190_v16  ;;  %v194_v25 = vmul.f32 0.5, %v190_v16 }
 0x132   :  { %537 = verf.f32 %v196_v18 }
 0x13a   :  { %v536_v19 = vpop.eup %535 }
 0x13b   :  { %v199_v21 = vadd.f32 1.0, %v536_v19 }
 0x13c   :  { %v538_v22 = vpop.eup %537 }
 0x13d   :  { %v201_v23 = vmul.f32 %v199_v21, %v193_v20  ;;  %v200_v24 = vadd.f32 1.0, %v538_v22 }
 0x13f   :  { %203 = vadd.xlane.f32.xlu0 %v201_v23  ;;  %v202_v26 = vmul.f32 %v200_v24, %v194_v25 }
 0x143   :  { %205 = vadd.xlane.f32.xlu0 %v202_v26 }
 0x1cc   :  { %v204_v30 = vpop.xlane.xlu0 %203 }
 0x1cd   :  { %v208_v31 = vmul.f32 0.0078125, %v204_v30 }
 0x1cf   :  { %v210_v32 = vsub.f32 %v201_v23, %v208_v31 }
 0x1d0   :  { %v206_v33 = vpop.xlane.xlu0 %205 }
 0x1d1   :  { %v209_v34 = vmul.f32 0.0078125, %v206_v33  ;;  %v212_v35 = vmul.f32 %v210_v32, %v210_v32 }
 0x1d3   :  { %v211_v36 = vsub.f32 %v202_v26, %v209_v34  ;;  %214 = vadd.xlane.f32.xlu1 %v212_v35 }
 0x1d5   :  { %v213_v37 = vmul.f32 %v211_v36, %v211_v36 }
 0x1d7   :  { %216 = vadd.xlane.f32.xlu1 %v213_v37 }
 0x260   :  { %v215_v52 = vpop.xlane.xlu1 %214 }
 0x261   :  { %v218_v53 = vmul.f32 0.0078125, %v215_v52 }
 0x263   :  { %v220_v54 = vadd.f32 1e-05, %v218_v53 }
 0x264   :  { %v217_v55 = vpop.xlane.xlu1 %216 }
 0x265   :  { %539 = vrsqrt.f32 %v220_v54  ;;  %v219_v56 = vmul.f32 0.0078125, %v217_v55 }
 0x267   :  { %v221_v57 = vadd.f32 1e-05, %v219_v56 }
 0x269   :  { %541 = vrsqrt.f32 %v221_v57 }
 0x26f   :  { %v540_v58 = vpop.eup %539 }
 0x270   :  { %v224_v59 = vmul.f32 %v540_v58, %v210_v32 }
 0x272   :  { %v233_v63 = vmul.f32 %v440_v60, %v224_v59 }
 0x273   :  { %v542_v61 = vpop.eup %541 }
 0x274   :  { %v225_v62 = vmul.f32 %v542_v61, %v211_v36  ;;  %v242_v2 = vadd.f32 %v441_v0, %v233_v63 }
 0x276   :  { %v234_v1 = vmul.f32 %v440_v60, %v225_v62 }
 0x278   :  { %v243_v3 = vadd.f32 %v441_v0, %v234_v1 }
 0x27a   :  { %v244_v4 = vpack.c.bf16 %v243_v3, %v242_v2 }
 0x27c   :  { %388 = vmatmul.mubr.bf16.vlgmr.msra.gmra.mrb[0].mxu1 %v244_v4 }
 0x34f   :  { %v389_v12 = vpop.f32.mrb[0].mxu1 }
 0x350   :  { %v390_v13 = vadd.f32 %v389_v12, %v268_v10  ;;  %v391_v14 = vpop.f32.mrb[1].mxu1 }
 0x351   :  { %v392_v15 = vadd.f32 %v391_v14, %v272_v11  ;;  %v393_v16 = vpop.f32.mrb[2].mxu1 }
 0x352   :  { %v394_v17 = vadd.f32 %v393_v16, %v268_v10  ;;  %v395_v18 = vpop.f32.mrb[3].mxu1 }
 0x353   :  { %v460_v19 = vpack.c.bf16 %v392_v15, %v390_v13  ;;  %v396_v20 = vadd.f32 %v395_v18, %v272_v11 }
 0x355   :  { %410 = vst [vmem:[#allocation9] sm:$0xff] %v460_v19  ;;  %v461_v21 = vpack.c.bf16 %v396_v20, %v394_v17 }
 0x357   :  { %411 = vst [vmem:[#allocation9 + $0x8] sm:$0xff] %v461_v21 }
 0x358   :  { %620 = shalt.err (!%p617_p0)
}
 0x359   :  { %s621_s24 = scalar_lea.hbm %s768_s7, 256 }
 0x35a   :  { %p622_p1 = scmp.ne.s32.totalorder %s768_s7, %s621_s24  ;;  %p625_p2 = scmp.lt.u32.totalorder %s621_s24, %s768_s7 }
 0x35c   :  { %p627_p3 = pnand %p625_p2, %p622_p1 }
 0x35e   :  { %630 = shalt.err (!%p627_p3)
}
 0x35f   :  { %423 = dma.vmem_to_hbm [thread:$0]  %s418_s4, 256, %s768_s7, [#allocation5], %s642_s0, %s642_s0, %s643_s27  }
 0x360   :  { %635 = dma.done.wait [#allocation5], 256  }
 0x361   :  { %636 = vsyncadd [#allocation5], 4294967040 }
 0x362   :  { %427 = vsyncpa [#allocation4], 1 }
 0x363   :  { %428 = vsyncpa [#allocation7], 1 }
 0x364   :  { %429 = vsyncpa [#allocation5], 1 }

</bundles_post_ra>
